<compile_context>
chip_gen: v6e
topology: v6e:2x2x1
jax: 0.10.0
libtpu: 0.0.40
codegen_flags: <defaults>
</compile_context>

<pallas_src>
import jax
import jax.numpy as jnp
from jax.experimental import pallas as pl
from jax.experimental.pallas import tpu as pltpu


def _cdiv(a, b):
    return -(-a // b)


def _round_up(n, m):
    return ((n + m - 1) // m) * m


def _block_diag(w, p):
    """Block-diagonal tiling of a small weight matrix, p copies."""
    if p == 1:
        return w
    r, c = w.shape
    out = jnp.zeros((r * p, c * p), w.dtype)
    for k in range(p):
        out = out.at[k * r:(k + 1) * r, k * c:(k + 1) * c].set(w)
    return out


def mlp_kernel(x_ref, w1_ref, b1_ref, w2_ref, b2_ref, w34_ref, b34_ref, o_ref):
    # x tile: (TR, 50p) in its stored dtype; cast to bf16 in-kernel (cheap VPU
    # op hidden under the pipeline) for a native bf16 MXU matmul, f32 acc.
    xb = x_ref[...].astype(jnp.bfloat16)

    # layer 1 + ReLU : (TR, 50p) @ (50p, 32p) -> lane-dense (TR, 32p)
    h1 = jnp.dot(xb, w1_ref[...], preferred_element_type=jnp.float32) + b1_ref[...]
    h1 = jnp.maximum(h1, 0.0)

    # layer 2 + ReLU : (TR, 32p) @ (32p, 16p) -> (TR, 16p), f32
    h2 = jnp.dot(h1, w2_ref[...], preferred_element_type=jnp.float32) + b2_ref[...]
    h2 = jnp.maximum(h2, 0.0)

    # fused layers 3+4 : (TR, 16p) @ (16p, p) -> (TR, p), then sigmoid.
    logits = jnp.dot(h2, w34_ref[...], preferred_element_type=jnp.float32) + b34_ref[...]
    o_ref[...] = jax.nn.sigmoid(logits).astype(o_ref.dtype)


def logistic_regression_forward(x, params, *, block_rows=4096, pack=None):
    """x: (B, 50) float.  Returns sigmoid(MLP(x)) with shape (B, 1) f32.

    block_rows: batch rows per tile (4096 default targets v7x; v6e/v5e can use
    8192+).  pack: batch rows packed per lane-row (4 default, 2 for v5e,
    auto-downgraded so it divides B).
    """
    (w1, b1, w2, b2, w3, b3, w4, b4) = params
    B, F = x.shape
    assert F == 50

    if pack is None:
        pack = 4 if B % 4 == 0 else (2 if B % 2 == 0 else 1)
    assert B % pack == 0, "pack must divide the batch size"

    # --- wrapper-side parameter prep (tiny, O(weights)) -----------------------
    # Fuse linear3+linear4: no activation between them => one (16, 1) linear map.
    w34 = w3 @ w4                                   # (16, 1)
    b34 = b3.reshape(1, 16) @ w4 + b4.reshape(1, 1)  # (1, 1)

    # Block-diagonal lane packing of the weights (exact: zero blocks add 0.0).
    W1 = _block_diag(w1.astype(jnp.float32), pack).astype(jnp.bfloat16)   # (50p, 32p)
    B1 = jnp.tile(b1.reshape(1, -1).astype(jnp.float32), (1, pack))       # (1, 32p)
    W2 = _block_diag(w2.astype(jnp.float32), pack)                        # (32p, 16p)
    B2 = jnp.tile(b2.reshape(1, -1).astype(jnp.float32), (1, pack))       # (1, 16p)
    W34 = _block_diag(w34.astype(jnp.float32), pack)                      # (16p, p)
    B34 = jnp.tile(b34.astype(jnp.float32), (1, pack))                    # (1, p)

    # Zero-copy packing of the batch: (B, 50) -> (B/p, 50p) row-major reshape.
    Rp = B // pack
    xp = x.reshape(Rp, 50 * pack)

    # Packed-row tile: multiple of 16 sublanes; aim for >=2 grid steps so the
    # batch axis can shard across both v7x TensorCores; ragged last tile is
    # handled by the cdiv grid (masked OOB writes), never read back.
    if Rp <= 16:
        TR = Rp                                   # single block = full extent
    else:
        cap = max(16, (block_rows // pack // 16) * 16)
        TR = min(cap, _round_up(_cdiv(Rp, 2), 16))
    grid = (_cdiv(Rp, TR),)

    def resident(shape):
        # Same block index every grid step => stays resident in VMEM.
        return pl.BlockSpec(shape, lambda i: (0, 0))

    out = pl.pallas_call(
        mlp_kernel,
        out_shape=jax.ShapeDtypeStruct((Rp, pack), jnp.float32),
        grid=grid,
        in_specs=[
            pl.BlockSpec((TR, 50 * pack), lambda i: (i, 0)),    # streamed x tile
            resident((50 * pack, 32 * pack)), resident((1, 32 * pack)),  # W1 (bf16), b1
            resident((32 * pack, 16 * pack)), resident((1, 16 * pack)),  # W2, b2
            resident((16 * pack, pack)), resident((1, pack)),            # fused W34, b34
        ],
        out_specs=pl.BlockSpec((TR, pack), lambda i: (i, 0)),
        compiler_params=pltpu.CompilerParams(
            dimension_semantics=("parallel",),
        ),
    )(xp, W1, B1, W2, B2, W34, B34)

    # Free reshape back to per-row outputs (row-major (Rp, p) == (B,)).
    return out.reshape(B, 1)


def init_params(key):
    """Deterministic synthetic parameters with nn.Linear-like shapes.

    Weights kept as (in, out) so the kernel computes x @ W + b
    (== torch Linear with W pre-transposed); biases as (1, out).
    """
    def linear(key, fan_in, fan_out):
        kw, kb = jax.random.split(key)
        bound = 1.0 / jnp.sqrt(fan_in)
        w = jax.random.uniform(kw, (fan_in, fan_out), jnp.float32, -bound, bound)
        b = jax.random.uniform(kb, (1, fan_out), jnp.float32, -bound, bound)
        return w, b

    k1, k2, k3, k4 = jax.random.split(key, 4)
    w1, b1 = linear(k1, 50, 32)
    w2, b2 = linear(k2, 32, 16)
    w3, b3 = linear(k3, 16, 16)
    w4, b4 = linear(k4, 16, 1)
    return (w1, b1, w2, b2, w3, b3, w4, b4)


def reference_forward(x, params):
    """Pure-JAX reference (unfused), with the same bf16 rounding of x/w1 as the kernel."""
    (w1, b1, w2, b2, w3, b3, w4, b4) = params
    xr = x.astype(jnp.bfloat16).astype(jnp.float32)
    w1r = w1.astype(jnp.bfloat16).astype(jnp.float32)
    h1 = jnp.maximum(xr @ w1r + b1, 0.0)
    h2 = jnp.maximum(h1 @ w2 + b2, 0.0)
    h3 = h2 @ w3 + b3
    return jax.nn.sigmoid(h3 @ w4 + b4)


if __name__ == "__main__":
    key = jax.random.PRNGKey(0)
    kx, kp = jax.random.split(key)
    params = init_params(kp)

    # Small batch: 4-way packed, single full-extent block.
    x_small = jax.random.normal(kx, (64, 50), dtype=jnp.float32)
    y = jax.block_until_ready(logistic_regression_forward(x_small, params))
    assert y.shape == (64, 1)
    assert jnp.allclose(y, reference_forward(x_small, params), atol=1e-4, rtol=1e-4)

    # Larger batch with a small tile: multi-step pipelined grid, resident
    # packed weights, ragged (masked) last tile.
    x_big = jax.random.normal(kx, (300, 50), dtype=jnp.float32)
    y2 = jax.block_until_ready(
        logistic_regression_forward(x_big, params, block_rows=256))
    assert y2.shape == (300, 1)
    assert jnp.allclose(y2, reference_forward(x_big, params), atol=1e-4, rtol=1e-4)

    # Odd batch size: auto-falls back to unpacked weights (pack=1).
    x_odd = jax.random.normal(kx, (7, 50), dtype=jnp.float32)
    y3 = jax.block_until_ready(logistic_regression_forward(x_odd, params))
    assert y3.shape == (7, 1)
    assert jnp.allclose(y3, reference_forward(x_odd, params), atol=1e-4, rtol=1e-4)

    print("KERNEL_OK")
</pallas_src>

<mosaic_0001>
module attributes {stable_mosaic.version = 11 : i64} {
  func.func @mlp_kernel(%arg0: i32, %arg1: memref<16x200xf32, #tpu.memory_space<vmem>>, %arg2: memref<200x128xbf16, #tpu.memory_space<vmem>>, %arg3: memref<1x128xf32, #tpu.memory_space<vmem>>, %arg4: memref<128x64xf32, #tpu.memory_space<vmem>>, %arg5: memref<1x64xf32, #tpu.memory_space<vmem>>, %arg6: memref<64x4xf32, #tpu.memory_space<vmem>>, %arg7: memref<1x4xf32, #tpu.memory_space<vmem>>, %arg8: memref<16x4xf32, #tpu.memory_space<vmem>>) attributes {dimension_semantics = [#tpu.dimension_semantics<parallel>], iteration_bounds = array<i64: 1>, scalar_prefetch = 0 : i64, scratch_operands = 0 : i64, tpu.core_type = #tpu.core_type<tc>, window_params = [{transform_indices = @transform_0, window_bounds = array<i64: 16, 200>}, {pipeline_mode = #tpu.pipeline_mode<synchronous>, transform_indices = @transform_1, window_bounds = array<i64: 200, 128>}, {pipeline_mode = #tpu.pipeline_mode<synchronous>, transform_indices = @transform_2, window_bounds = array<i64: 1, 128>}, {pipeline_mode = #tpu.pipeline_mode<synchronous>, transform_indices = @transform_3, window_bounds = array<i64: 128, 64>}, {pipeline_mode = #tpu.pipeline_mode<synchronous>, transform_indices = @transform_4, window_bounds = array<i64: 1, 64>}, {pipeline_mode = #tpu.pipeline_mode<synchronous>, transform_indices = @transform_5, window_bounds = array<i64: 64, 4>}, {pipeline_mode = #tpu.pipeline_mode<synchronous>, transform_indices = @transform_6, window_bounds = array<i64: 1, 4>}, {transform_indices = @transform_7, window_bounds = array<i64: 16, 4>}]} {
    %c0 = arith.constant 0 : index
    %c0_0 = arith.constant 0 : index
    %0 = vector.load %arg1[%c0, %c0_0] : memref<16x200xf32, #tpu.memory_space<vmem>>, vector<16x200xf32>
    %1 = arith.truncf %0 : vector<16x200xf32> to vector<16x200xbf16>
    %c0_1 = arith.constant 0 : index
    %c0_2 = arith.constant 0 : index
    %2 = vector.load %arg2[%c0_1, %c0_2] : memref<200x128xbf16, #tpu.memory_space<vmem>>, vector<200x128xbf16>
    %cst = arith.constant dense<0.000000e+00> : vector<16x128xf32>
    %3 = tpu.matmul %1, %2, %cst {dimension_numbers = #tpu.dot_dimension_numbers<[1], [0], [0], [1], [0, 0, 1, 1], [], []>} : vector<16x200xbf16>, vector<200x128xbf16>, vector<16x128xf32> -> vector<16x128xf32>
    %c0_3 = arith.constant 0 : index
    %c0_4 = arith.constant 0 : index
    %4 = vector.load %arg3[%c0_3, %c0_4] : memref<1x128xf32, #tpu.memory_space<vmem>>, vector<1x128xf32>
    %5 = vector.broadcast %4 : vector<1x128xf32> to vector<16x128xf32>
    %6 = arith.addf %3, %5 : vector<16x128xf32>
    %cst_5 = arith.constant 0.000000e+00 : f32
    %7 = vector.broadcast %cst_5 : f32 to vector<16x128xf32>
    %8 = arith.maximumf %6, %7 : vector<16x128xf32>
    %c0_6 = arith.constant 0 : index
    %c0_7 = arith.constant 0 : index
    %9 = vector.load %arg4[%c0_6, %c0_7] : memref<128x64xf32, #tpu.memory_space<vmem>>, vector<128x64xf32>
    %cst_8 = arith.constant dense<0.000000e+00> : vector<16x64xf32>
    %10 = tpu.matmul %8, %9, %cst_8 {dimension_numbers = #tpu.dot_dimension_numbers<[1], [0], [0], [1], [0, 0, 1, 1], [], []>} : vector<16x128xf32>, vector<128x64xf32>, vector<16x64xf32> -> vector<16x64xf32>
    %c0_9 = arith.constant 0 : index
    %c0_10 = arith.constant 0 : index
    %11 = vector.load %arg5[%c0_9, %c0_10] : memref<1x64xf32, #tpu.memory_space<vmem>>, vector<1x64xf32>
    %12 = vector.broadcast %11 : vector<1x64xf32> to vector<16x64xf32>
    %13 = arith.addf %10, %12 : vector<16x64xf32>
    %cst_11 = arith.constant 0.000000e+00 : f32
    %14 = vector.broadcast %cst_11 : f32 to vector<16x64xf32>
    %15 = arith.maximumf %13, %14 : vector<16x64xf32>
    %c0_12 = arith.constant 0 : index
    %c0_13 = arith.constant 0 : index
    %16 = vector.load %arg6[%c0_12, %c0_13] : memref<64x4xf32, #tpu.memory_space<vmem>>, vector<64x4xf32>
    %cst_14 = arith.constant dense<0.000000e+00> : vector<16x4xf32>
    %17 = tpu.matmul %15, %16, %cst_14 {dimension_numbers = #tpu.dot_dimension_numbers<[1], [0], [0], [1], [0, 0, 1, 1], [], []>} : vector<16x64xf32>, vector<64x4xf32>, vector<16x4xf32> -> vector<16x4xf32>
    %c0_15 = arith.constant 0 : index
    %c0_16 = arith.constant 0 : index
    %18 = vector.load %arg7[%c0_15, %c0_16] : memref<1x4xf32, #tpu.memory_space<vmem>>, vector<1x4xf32>
    %19 = vector.broadcast %18 : vector<1x4xf32> to vector<16x4xf32>
    %20 = arith.addf %17, %19 : vector<16x4xf32>
    %21 = arith.negf %20 : vector<16x4xf32>
    %22 = math.exp %21 : vector<16x4xf32>
    %cst_17 = arith.constant 1.000000e+00 : f32
    %23 = vector.broadcast %cst_17 : f32 to vector<16x4xf32>
    %24 = arith.addf %23, %22 : vector<16x4xf32>
    %25 = arith.divf %23, %24 : vector<16x4xf32>
    %c0_18 = arith.constant 0 : index
    %c0_19 = arith.constant 0 : index
    %26 = vector.load %arg8[%c0_18, %c0_19] : memref<16x4xf32, #tpu.memory_space<vmem>>, vector<16x4xf32>
    tpu.vector_store %arg8[%c0_18, %c0_19], %25 {strides = array<i32>} : memref<16x4xf32, #tpu.memory_space<vmem>>, vector<16x4xf32>,
    return
  }
  func.func @transform_0(%arg0: i32) -> (i32, i32) {
    %c0_i32 = arith.constant 0 : i32
    %c0_i32_0 = arith.constant 0 : i32
    return %arg0, %c0_i32 : i32, i32
  }
  func.func @transform_1(%arg0: i32) -> (i32, i32) {
    %c0_i32 = arith.constant 0 : i32
    %c0_i32_0 = arith.constant 0 : i32
    %c0_i32_1 = arith.constant 0 : i32
    return %c0_i32, %c0_i32_0 : i32, i32
  }
  func.func @transform_2(%arg0: i32) -> (i32, i32) {
    %c0_i32 = arith.constant 0 : i32
    %c0_i32_0 = arith.constant 0 : i32
    %c0_i32_1 = arith.constant 0 : i32
    return %c0_i32, %c0_i32_0 : i32, i32
  }
  func.func @transform_3(%arg0: i32) -> (i32, i32) {
    %c0_i32 = arith.constant 0 : i32
    %c0_i32_0 = arith.constant 0 : i32
    %c0_i32_1 = arith.constant 0 : i32
    return %c0_i32, %c0_i32_0 : i32, i32
  }
  func.func @transform_4(%arg0: i32) -> (i32, i32) {
    %c0_i32 = arith.constant 0 : i32
    %c0_i32_0 = arith.constant 0 : i32
    %c0_i32_1 = arith.constant 0 : i32
    return %c0_i32, %c0_i32_0 : i32, i32
  }
  func.func @transform_5(%arg0: i32) -> (i32, i32) {
    %c0_i32 = arith.constant 0 : i32
    %c0_i32_0 = arith.constant 0 : i32
    %c0_i32_1 = arith.constant 0 : i32
    return %c0_i32, %c0_i32_0 : i32, i32
  }
  func.func @transform_6(%arg0: i32) -> (i32, i32) {
    %c0_i32 = arith.constant 0 : i32
    %c0_i32_0 = arith.constant 0 : i32
    %c0_i32_1 = arith.constant 0 : i32
    return %c0_i32, %c0_i32_0 : i32, i32
  }
  func.func @transform_7(%arg0: i32) -> (i32, i32) {
    %c0_i32 = arith.constant 0 : i32
    %c0_i32_0 = arith.constant 0 : i32
    return %arg0, %c0_i32 : i32, i32
  }
}

</mosaic_0001>

<bundles_post_ra>
// kernel: tpu_custom_call.1
= control target key start
LH: loop header
LB: loop body
LE: loop exit
PB: predicated region body
PF: predicated region fallthrough
CT: control target
= control target key end

     0   :  { %v532_v0 = vmov 0   ;;  %vm140_vm0 = vcmask 588800   ;;  %vm144_vm1 = vcmask 1043456   ;;  %vm306_vm2 = vcmask 523264   ;;  %s724_s1 = inlined_call_operand.vmem [shape: bf16[200,128], index: 1, kind: input, shape index: {}]   ;;  %s725_s0 = inlined_call_operand.vmem [shape: f32[16,200], index: 0, kind: input, shape index: {}]   ;;  %s726_s3 = inlined_call_operand.vmem [shape: f32[128,64], index: 3, kind: input, shape index: {}]   ;;  %s727_s5 = inlined_call_operand.vmem [shape: f32[64,4], index: 5, kind: input, shape index: {}]   ;;  %s728_s2 = inlined_call_operand.vmem [shape: f32[1,128], index: 2, kind: input, shape index: {}]   ;;  %s729_s4 = inlined_call_operand.vmem [shape: f32[1,64], index: 4, kind: input, shape index: {}]   ;;  %s730_s6 = inlined_call_operand.vmem [shape: f32[1,4], index: 6, kind: input, shape index: {}]   ;;  %s731_s7 = inlined_call_operand.vmem [shape: f32[16,4], index: 7, kind: output, shape index: {}]  }
   0x1   :  { %148 = vmatprep.subr.bf16.mxu0 %v532_v0  ;;  %v511_v1 = vld [vmem:[%s724_s1 + $0x38] sm:$0xff]   ;;  %v512_v2 = vld [vmem:[%s724_s1 + $0x30] sm:$0xff]   ;;  %v513_v3 = vld [vmem:[%s724_s1 + $0x28] sm:$0xff]   ;;  %vm400_vm3 = vcmask 31744  }
   0x2   :  { %149 = vmatpush1.bf16.msra.mxu0 %v511_v1  ;;  %v514_v4 = vld [vmem:[%s724_s1 + $0x20] sm:$0xff]   ;;  %v28_v5 = vld [vmem:[%s725_s0 + $0x8] sm:$0xff]  ;;  %v30_v6 = vld [vmem:[%s725_s0 + $0x18] sm:$0xff] }
   0x3   :  { %150 = vmatprep.subr.bf16.mxu0 %v532_v0  ;;  %v515_v7 = vld [vmem:[%s724_s1 + $0x18] sm:$0xff]   ;;  %v32_v8 = vpack.c.bf16 %v30_v6, %v28_v5  ;;  %v205_v10 = vld [vmem:[%s726_s3 + $0x70] sm:$0xff]  ;;  %v204_v11 = vld [vmem:[%s726_s3 + $0x68] sm:$0xff] }
   0x4   :  { %v206_v9 = vld [vmem:[%s726_s3 + $0x78] sm:$0xff]  ;;  %v516_v12 = vld [vmem:[%s724_s1 + $0x10] sm:$0xff]   ;;  %v203_v13 = vld [vmem:[%s726_s3 + $0x60] sm:$0xff] }
   0x5   :  { %456 = vmatprep.subr.mxu1 %v206_v9  ;;  %421 = vmatprep.mubr.msk.bf16.mxu0 %vm140_vm0, %v32_v8  ;;  %v202_v14 = vld [vmem:[%s726_s3 + $0x58] sm:$0xff]  ;;  %v517_v15 = vld [vmem:[%s724_s1 + $0x8] sm:$0xff]   ;;  %v201_v16 = vld [vmem:[%s726_s3 + $0x50] sm:$0xff] }
   0x6   :  { %151 = vmatpush1.bf16.msra.mxu0 %v512_v2  ;;  %457 = vmatpush3.msra.mxu1 %v206_v9  ;;  %v200_v17 = vld [vmem:[%s726_s3 + $0x48] sm:$0xff]  ;;  %v518_v18 = vld [vmem:[%s724_s1] sm:$0xff]   ;;  %v198_v21 = vld [vmem:[%s726_s3 + $0x38] sm:$0xff] }
   0x7   :  { %152 = vmatprep.subr.bf16.mxu0 %v532_v0  ;;  %458 = vmatprep.subr.mxu1 %v205_v10  ;;  %v199_v19 = vld [vmem:[%s726_s3 + $0x40] sm:$0xff]  ;;  %v197_v22 = vld [vmem:[%s726_s3 + $0x30] sm:$0xff]  ;;  %v196_v24 = vld [vmem:[%s726_s3 + $0x28] sm:$0xff] }
   0x8   :  { %459 = vmatpush3.msra.mxu1 %v205_v10  ;;  %v519_v20 = vld [vmem:[%s724_s1 + $0x60] ss:$0 sps:$4 sm:$0xff]   ;;  %v520_v25 = vld [vmem:[%s724_s1 + $0x58] sm:$0xff]   ;;  %v521_v27 = vld [vmem:[%s724_s1 + $0x50] sm:$0xff]  }
   0x9   :  { %460 = vmatprep.subr.mxu1 %v204_v11  ;;  %v146_v23 = vsel %vm144_vm1, %v519_v20, 0  ;;  %v195_v26 = vld [vmem:[%s726_s3 + $0x20] sm:$0xff]  ;;  %v522_v28 = vld [vmem:[%s724_s1 + $0x48] sm:$0xff]   ;;  %v29_v31 = vld [vmem:[%s725_s0 + $0x10] sm:$0xff] }
   0xa   :  { %153 = vmatpush1.bf16.msra.mxu0 %v513_v3  ;;  %461 = vmatpush3.msra.mxu1 %v204_v11  ;;  %v523_v29 = vld [vmem:[%s724_s1 + $0x40] sm:$0xff]   ;;  %v194_v33 = vld [vmem:[%s726_s3 + $0x18] sm:$0xff]  ;;  %v193_v34 = vld [vmem:[%s726_s3 + $0x10] sm:$0xff] }
   0xb   :  { %154 = vmatprep.subr.bf16.mxu0 %v532_v0  ;;  %462 = vmatprep.subr.mxu1 %v203_v13  ;;  %v27_v30 = vld [vmem:[%s725_s0] sm:$0xff]  ;;  %v192_v35 = vld [vmem:[%s726_s3 + $0x8] sm:$0xff]  ;;  %v298_v37 = vld [vmem:[%s727_s5 + $0x38] sm:$0xff] }
   0xc   :  { %463 = vmatpush3.msra.mxu1 %v203_v13  ;;  %v31_v32 = vpack.c.bf16 %v29_v31, %v27_v30  ;;  %v191_v36 = vld [vmem:[%s726_s3] sm:$0xff]  ;;  %v297_v47 = vld [vmem:[%s727_s5 + $0x30] sm:$0xff]  ;;  %v296_v48 = vld [vmem:[%s727_s5 + $0x28] sm:$0xff] }
   0xd   :  { %464 = vmatprep.subr.mxu1 %v202_v14  ;;  %v407_v38 = vld [vmem:[%s728_s2] ss:$0 sm:$0xff]  ;;  %v294_v50 = vld [vmem:[%s727_s5 + $0x18] sm:$0xff]  ;;  %v293_v51 = vld [vmem:[%s727_s5 + $0x10] sm:$0xff] }
   0xe   :  { %155 = vmatpush1.bf16.msra.mxu0 %v514_v4  ;;  %465 = vmatpush3.msra.mxu1 %v202_v14  ;;  %v295_v49 = vld [vmem:[%s727_s5 + $0x20] sm:$0xff]  ;;  %v292_v52 = vld [vmem:[%s727_s5 + $0x8] sm:$0xff] }
   0xf   :  { %156 = vmatprep.subr.bf16.mxu0 %v532_v0  ;;  %466 = vmatprep.subr.mxu1 %v201_v16  ;;  %v291_v53 = vld [vmem:[%s727_s5] sm:$0xff] }
  0x10   :  { %467 = vmatpush3.msra.mxu1 %v201_v16  ;;  %v422_v54 = vld [vmem:[%s729_s4] ss:$0 sm:$0xff] }
  0x11   :  { %468 = vmatprep.subr.mxu1 %v200_v17  ;;  %v423_v61 = vld [vmem:[%s730_s6] ss:$0 sm:$0xff] }
  0x12   :  { %157 = vmatpush1.bf16.msra.mxu0 %v515_v7  ;;  %469 = vmatpush3.msra.mxu1 %v200_v17 }
  0x13   :  { %158 = vmatprep.subr.bf16.mxu0 %v532_v0  ;;  %470 = vmatprep.subr.mxu1 %v199_v19 }
  0x14   :  { %471 = vmatpush3.msra.mxu1 %v199_v19 }
  0x15   :  { %472 = vmatprep.subr.mxu1 %v198_v21 }
  0x16   :  { %159 = vmatpush1.bf16.msra.mxu0 %v516_v12  ;;  %473 = vmatpush3.msra.mxu1 %v198_v21 }
  0x17   :  { %160 = vmatprep.subr.bf16.mxu0 %v532_v0  ;;  %474 = vmatprep.subr.mxu1 %v197_v22 }
  0x18   :  { %475 = vmatpush3.msra.mxu1 %v197_v22 }
  0x19   :  { %476 = vmatprep.subr.mxu1 %v196_v24 }
  0x1a   :  { %161 = vmatpush1.bf16.msra.mxu0 %v517_v15  ;;  %477 = vmatpush3.msra.mxu1 %v196_v24 }
  0x1b   :  { %162 = vmatprep.subr.bf16.mxu0 %v532_v0  ;;  %478 = vmatprep.subr.mxu1 %v195_v26 }
  0x1c   :  { %479 = vmatpush3.msra.mxu1 %v195_v26 }
  0x1d   :  { %480 = vmatprep.subr.mxu1 %v194_v33 }
  0x1e   :  { %163 = vmatpush1.bf16.msra.mxu0 %v518_v18  ;;  %481 = vmatpush3.msra.mxu1 %v194_v33 }
  0x1f   :  { %170 = vmatprep.subr.bf16.mxu0 %v532_v0  ;;  %482 = vmatprep.subr.mxu1 %v193_v34 }
  0x20   :  { %483 = vmatpush3.msra.mxu1 %v193_v34 }
  0x21   :  { %484 = vmatprep.subr.mxu1 %v192_v35 }
  0x22   :  { %171 = vmatpush2.bf16.msra.mxu0 %v146_v23  ;;  %485 = vmatpush3.msra.mxu1 %v192_v35 }
  0x23   :  { %172 = vmatprep.subr.bf16.mxu0 %v532_v0  ;;  %486 = vmatprep.subr.mxu1 %v191_v36 }
  0x24   :  { %487 = vmatpush3.msra.mxu1 %v191_v36 }
  0x25   :  { %491 = vmatprep.subr.mxu1 %v298_v37 }
  0x26   :  { %173 = vmatpush2.bf16.msra.mxu0 %v520_v25 }
  0x27   :  { %174 = vmatprep.subr.bf16.mxu0 %v532_v0 }
  0x2a   :  { %175 = vmatpush2.bf16.msra.mxu0 %v521_v27 }
  0x2b   :  { %176 = vmatprep.subr.bf16.mxu0 %v532_v0 }
  0x2e   :  { %177 = vmatpush2.bf16.msra.mxu0 %v522_v28 }
  0x2f   :  { %178 = vmatprep.subr.bf16.mxu0 %v532_v0 }
  0x32   :  { %179 = vmatpush2.bf16.msra.mxu0 %v523_v29 }
  0x35   :  { %181 = vmatmul.mubr.bf16.vlgmr.msra.gmra.mxu0 %v31_v32 }
  0xf5   :  { %v182_v39 = vpop.f32.mrf.mxu0 }
  0xf6   :  { %v183_v40 = vadd.f32 %v407_v38, %v182_v39 }
  0xf7   :  { %v184_v41 = vpop.f32.mrf.mxu0 }
  0xf8   :  { %v189_v42 = vmax.f32 %v183_v40, 0.0 }
  0xf9   :  { %v185_v43 = vpop.f32.mrf.mxu0 }
  0xfa   :  { %v186_v44 = vadd.f32 %v407_v38, %v185_v43  ;;  %488 = vmatprep.mubr.f32.mxu1 %v189_v42 }
  0xfb   :  { %v187_v45 = vpop.f32.mrf.mxu0 }
  0xfc   :  { %v190_v46 = vmax.f32 %v186_v44, 0.0 }
  0xfe   :  { %489 = vmatmul.mubr.f32.vlgmr.msra.gmra.mxu1 %v190_v46 }
  0xff   :  { %492 = vmatpush3.msra.mxu1 %v298_v37 }
 0x100   :  { %493 = vmatprep.subr.mxu1 %v297_v47 }
 0x101   :  { %494 = vmatpush3.msra.mxu1 %v297_v47 }
 0x102   :  { %495 = vmatprep.subr.mxu1 %v296_v48 }
 0x103   :  { %496 = vmatpush3.msra.mxu1 %v296_v48 }
 0x104   :  { %497 = vmatprep.subr.mxu1 %v295_v49 }
 0x105   :  { %498 = vmatpush3.msra.mxu1 %v295_v49 }
 0x106   :  { %499 = vmatprep.subr.mxu1 %v294_v50 }
 0x107   :  { %500 = vmatpush3.msra.mxu1 %v294_v50 }
 0x108   :  { %501 = vmatprep.subr.mxu1 %v293_v51 }
 0x109   :  { %502 = vmatpush3.msra.mxu1 %v293_v51 }
 0x10a   :  { %503 = vmatprep.subr.mxu1 %v292_v52 }
 0x10b   :  { %504 = vmatpush3.msra.mxu1 %v292_v52 }
 0x10c   :  { %505 = vmatprep.subr.mxu1 %v291_v53 }
 0x10d   :  { %506 = vmatpush3.msra.mxu1 %v291_v53 }
 0x1be   :  { %v490_v55 = vpop.f32.mrf.mxu1 }
 0x1bf   :  { %v286_v56 = vadd.f32 %v490_v55, %v422_v54 }
 0x1c0   :  { %v280_v57 = vpop.f32.mrf.mxu1 }
 0x1c1   :  { %v281_v58 = vadd.f32 %v422_v54, %v280_v57  ;;  %v290_v60 = vmax.f32 %v286_v56, 0.0 }
 0x1c3   :  { %v289_v59 = vmax.f32 %v281_v58, 0.0 }
 0x1c5   :  { %507 = vmatprep.mubr.msk.f32.mxu1 %vm306_vm2, %v289_v59 }
 0x1c6   :  { %508 = vmatmul.mubr.msk.f32.vlgmr.msra.gmra.mxu1 %vm306_vm2, %v290_v60 }
 0x286   :  { %v509_v62 = vpop.f32.mrf.mxu1 }
 0x287   :  { %v385_v63 = vadd.f32 %v509_v62, %v423_v61 }
 0x288   :  { %v379_v0 = vpop.f32.mrf.mxu1 }
 0x289   :  { %v427_v1 = vmul.f32 -1.442695, %v385_v63  ;;  %v380_v2 = vadd.f32 %v423_v61, %v379_v0 }
 0x28b   :  { %524 = vpow2.f32 %v427_v1  ;;  %v426_v3 = vmul.f32 -1.442695, %v380_v2 }
 0x28d   :  { %526 = vpow2.f32 %v426_v3 }
 0x298   :  { %v525_v4 = vpop.eup %524 }
 0x299   :  { %v395_v5 = vadd.f32 1.0, %v525_v4 }
 0x29a   :  { %v527_v6 = vpop.eup %526 }
 0x29b   :  { %528 = vrcp.f32 %v395_v5  ;;  %v394_v7 = vadd.f32 1.0, %v527_v6 }
 0x29d   :  { %530 = vrcp.f32 %v394_v7 }
 0x2a8   :  { %v529_v8 = vpop.eup %528 }
 0x2a9   :  { %402 = vst.msk [vmem:[%s731_s7 + $0x8] sm:$0xff] %vm400_vm3, %v529_v8 }
 0x2aa   :  { %v531_v9 = vpop.eup %530 }
 0x2ab   :  { %401 = vst.msk [vmem:[%s731_s7] sm:$0xff] %vm400_vm3, %v531_v9 }

</bundles_post_ra>
